<compile_context>
chip_gen: v5e
topology: v5e:2x2
jax: 0.10.0
libtpu: 0.0.40
codegen_flags: <defaults>
</compile_context>

<pallas_src>
import functools

import jax
import jax.numpy as jnp
import numpy as np
from jax import lax
from jax.experimental import pallas as pl
from jax.experimental.pallas import tpu as pltpu


def _round_up(x, m):
    return ((x + m - 1) // m) * m


# ----------------------------------------------------------------------------
# Fused kernel: per-batch spatial avg+max pooling over x1 and x2, then the
# shared MLP (Linear -> ReLU -> Linear) applied to both pooled vectors, summed
# and passed through a sigmoid.  Grid = (B, n_spatial_tiles); the spatial axis
# is a reduction ("arbitrary", last) carried in VMEM scratch accumulators.
# ----------------------------------------------------------------------------
def _channel_attn_kernel(x1_ref, x2_ref, w1_ref, b1_ref, w2_ref, b2_ref,
                         out_ref, sum1, sum2, mx1, mx2, *, hw, ragged):
    s = pl.program_id(1)
    n_s = pl.num_programs(1)
    c = x1_ref.shape[1]
    ts = x1_ref.shape[2]
    neg = jnp.finfo(jnp.float32).min

    @pl.when(s == 0)
    def _init():
        sum1[...] = jnp.zeros_like(sum1)
        sum2[...] = jnp.zeros_like(sum2)
        mx1[...] = jnp.full_like(mx1, neg)
        mx2[...] = jnp.full_like(mx2, neg)

    x1 = x1_ref[0].astype(jnp.float32)                  # (C, TS)
    x2 = x2_ref[0].astype(jnp.float32)

    if ragged:
        # Out-of-bounds lanes of the (Pallas-padded) last tile hold garbage:
        # mask them out of both the sum and the max.  Pure VPU selects, fully
        # hidden under the HBM-bound streaming of the image tiles.
        pos = lax.broadcasted_iota(jnp.int32, (c, ts), 1) + s * ts
        valid = pos < hw
        x1s = jnp.where(valid, x1, 0.0)
        x2s = jnp.where(valid, x2, 0.0)
        x1m = jnp.where(valid, x1, neg)
        x2m = jnp.where(valid, x2, neg)
    else:
        x1s, x2s, x1m, x2m = x1, x2, x1, x2

    sum1[...] += jnp.sum(x1s, axis=-1, keepdims=True)   # (C, 1)
    sum2[...] += jnp.sum(x2s, axis=-1, keepdims=True)
    mx1[...] = jnp.maximum(mx1[...], jnp.max(x1m, axis=-1, keepdims=True))
    mx2[...] = jnp.maximum(mx2[...], jnp.max(x2m, axis=-1, keepdims=True))

    @pl.when(s == n_s - 1)
    def _finalize():
        inv_hw = jnp.float32(1.0 / hw)
        # Pooled vectors as (2C, 1) columns; channel order = cat((x1, x2), dim=1).
        v_avg = jnp.concatenate([sum1[...], sum2[...]], axis=0) * inv_hw
        v_max = jnp.concatenate([mx1[...], mx2[...]], axis=0)
        v = jnp.concatenate([v_avg, v_max], axis=1)      # (2C, 2)

        # Shared MLP on both pooled vectors in ONE W1 matmul.
        h = jnp.dot(w1_ref[...], v, preferred_element_type=jnp.float32) + b1_ref[...]
        h = jnp.maximum(h, 0.0)                          # (Hd, 2)
        h_sum = jnp.sum(h, axis=1, keepdims=True)        # (Hd, 1)
        # mlp(avg) + mlp(max) = W2 @ (h_avg + h_max) + 2*b2
        se = (jnp.dot(w2_ref[...], h_sum, preferred_element_type=jnp.float32)
              + 2.0 * b2_ref[...])                       # (2C, 1)
        out_ref[0] = 1.0 / (1.0 + jnp.exp(-se))          # sigmoid


def channel_attention_forward(x1, x2, params, *, spatial_tile=2048):
    """x1, x2: (B, C, H, W).  Returns channel weights (2, B, C, 1, 1) f32."""
    B, C, H, W = x1.shape
    hw = H * W
    c2 = 2 * C
    hd = params["w1"].shape[0]

    # Lane-dense spatial tile (multiple of 128); cap the per-input block to
    # ~1 MiB so 2 inputs x 2 pipeline buffers stay far below the scoped VMEM
    # limit on every TPU generation.
    ts = _round_up(min(spatial_tile, hw), 128)
    vmem_cap = max(128, (((1 << 20) // (4 * C)) // 128) * 128)
    ts = max(128, min(ts, vmem_cap))
    n_s = pl.cdiv(hw, ts)
    ragged = (hw % ts) != 0

    x1f = x1.reshape(B, C, hw)                           # free reshape, no copy
    x2f = x2.reshape(B, C, hw)
    b1c = params["b1"].reshape(hd, 1)
    b2c = params["b2"].reshape(c2, 1)

    kernel = functools.partial(_channel_attn_kernel, hw=hw, ragged=ragged)
    img_spec = pl.BlockSpec((1, C, ts), lambda b, s: (b, 0, s))

    out = pl.pallas_call(
        kernel,
        out_shape=jax.ShapeDtypeStruct((B, c2, 1), jnp.float32),
        grid=(B, n_s),
        in_specs=[
            img_spec,                                     # x1 tile
            img_spec,                                     # x2 tile
            pl.BlockSpec((hd, c2), lambda b, s: (0, 0)),  # W1 (resident)
            pl.BlockSpec((hd, 1), lambda b, s: (0, 0)),   # b1
            pl.BlockSpec((c2, hd), lambda b, s: (0, 0)),  # W2
            pl.BlockSpec((c2, 1), lambda b, s: (0, 0)),   # b2
        ],
        out_specs=pl.BlockSpec((1, c2, 1), lambda b, s: (b, 0, 0)),
        scratch_shapes=[
            pltpu.VMEM((C, 1), jnp.float32),              # sum(x1) per channel
            pltpu.VMEM((C, 1), jnp.float32),              # sum(x2) per channel
            pltpu.VMEM((C, 1), jnp.float32),              # max(x1) per channel
            pltpu.VMEM((C, 1), jnp.float32),              # max(x2) per channel
        ],
        compiler_params=pltpu.CompilerParams(
            dimension_semantics=("parallel", "arbitrary")),
    )(x1f, x2f, params["w1"], b1c, params["w2"], b2c)

    # (B, 2C, 1) -> (B, 2, C, 1, 1) -> permute(1, 0, 2, 3, 4) = (2, B, C, 1, 1)
    return out.reshape(B, 2, C, 1, 1).transpose(1, 0, 2, 3, 4)


# ----------------------------------------------------------------------------
# Pure-JAX reference mirroring the PyTorch forward (for the correctness check)
# ----------------------------------------------------------------------------
def reference_forward(x1, x2, params):
    B, C, H, W = x1.shape
    x = jnp.concatenate([x1, x2], axis=1)                 # (B, 2C, H, W)
    avg_v = x.mean(axis=(2, 3))                           # (B, 2C)
    max_v = x.max(axis=(2, 3))                            # (B, 2C)

    def mlp(v):
        h = jnp.maximum(v @ params["w1"].T + params["b1"], 0.0)
        return h @ params["w2"].T + params["b2"]

    stat = jax.nn.sigmoid(mlp(avg_v) + mlp(max_v))        # (B, 2C)
    return stat.reshape(B, 2, C, 1, 1).transpose(1, 0, 2, 3, 4)


if __name__ == "__main__":
    B, DIM, H, W = 2, 32, 16, 16
    REDUCTION = 4
    HID = (2 * DIM) // REDUCTION

    key = jax.random.PRNGKey(0)
    k1, k2, k3, k4, k5, k6 = jax.random.split(key, 6)
    params = {
        # nn.Linear(2*dim, 2*dim//reduction): torch weight layout (out, in)
        "w1": jax.random.normal(k1, (HID, 2 * DIM), jnp.float32) * 0.05,
        "b1": jax.random.normal(k2, (HID,), jnp.float32) * 0.05,
        # nn.Linear(2*dim//reduction, 2*dim)
        "w2": jax.random.normal(k3, (2 * DIM, HID), jnp.float32) * 0.05,
        "b2": jax.random.normal(k4, (2 * DIM,), jnp.float32) * 0.05,
    }
    x1 = jax.random.normal(k5, (B, DIM, H, W), jnp.float32)
    x2 = jax.random.normal(k6, (B, DIM, H, W), jnp.float32)

    out = jax.block_until_ready(channel_attention_forward(x1, x2, params))
    ref = jax.block_until_ready(reference_forward(x1, x2, params))

    assert out.shape == (2, B, DIM, 1, 1), out.shape
    np.testing.assert_allclose(np.asarray(out), np.asarray(ref),
                               rtol=1e-3, atol=1e-3)
    print("KERNEL_OK")
</pallas_src>

<mosaic_0001>
module attributes {stable_mosaic.version = 11 : i64} {
  func.func @_channel_attn_kernel(%arg0: i32, %arg1: i32, %arg2: memref<1x32x256xf32, #tpu.memory_space<vmem>>, %arg3: memref<1x32x256xf32, #tpu.memory_space<vmem>>, %arg4: memref<16x64xf32, #tpu.memory_space<vmem>>, %arg5: memref<16x1xf32, #tpu.memory_space<vmem>>, %arg6: memref<64x16xf32, #tpu.memory_space<vmem>>, %arg7: memref<64x1xf32, #tpu.memory_space<vmem>>, %arg8: memref<1x64x1xf32, #tpu.memory_space<vmem>>, %arg9: memref<32x1xf32, #tpu.memory_space<vmem>>, %arg10: memref<32x1xf32, #tpu.memory_space<vmem>>, %arg11: memref<32x1xf32, #tpu.memory_space<vmem>>, %arg12: memref<32x1xf32, #tpu.memory_space<vmem>>) attributes {dimension_semantics = [#tpu.dimension_semantics<parallel>, #tpu.dimension_semantics<arbitrary>], iteration_bounds = array<i64: 2, 1>, scalar_prefetch = 0 : i64, scratch_operands = 4 : i64, tpu.core_type = #tpu.core_type<tc>, window_params = [{transform_indices = @transform_0, window_bounds = array<i64: 1, 32, 256>}, {transform_indices = @transform_1, window_bounds = array<i64: 1, 32, 256>}, {pipeline_mode = #tpu.pipeline_mode<synchronous>, transform_indices = @transform_2, window_bounds = array<i64: 16, 64>}, {pipeline_mode = #tpu.pipeline_mode<synchronous>, transform_indices = @transform_3, window_bounds = array<i64: 16, 1>}, {pipeline_mode = #tpu.pipeline_mode<synchronous>, transform_indices = @transform_4, window_bounds = array<i64: 64, 16>}, {pipeline_mode = #tpu.pipeline_mode<synchronous>, transform_indices = @transform_5, window_bounds = array<i64: 64, 1>}, {transform_indices = @transform_6, window_bounds = array<i64: 1, 64, 1>}]} {
    %c0_i32 = arith.constant 0 : i32
    %0 = arith.cmpi eq, %arg1, %c0_i32 : i32
    %1 = arith.extui %0 : i1 to i32
    %c0_i32_0 = arith.constant 0 : i32
    %2 = arith.cmpi ne, %1, %c0_i32_0 : i32
    scf.if %2 {
      %cst_27 = arith.constant 0.000000e+00 : f32
      %30 = vector.broadcast %cst_27 : f32 to vector<32x1xf32>
      %c0_28 = arith.constant 0 : index
      %c0_29 = arith.constant 0 : index
      %31 = vector.load %arg9[%c0_28, %c0_29] : memref<32x1xf32, #tpu.memory_space<vmem>>, vector<32x1xf32>
      tpu.vector_store %arg9[%c0_28, %c0_29], %30 {strides = array<i32>} : memref<32x1xf32, #tpu.memory_space<vmem>>, vector<32x1xf32>,
      %cst_30 = arith.constant 0.000000e+00 : f32
      %32 = vector.broadcast %cst_30 : f32 to vector<32x1xf32>
      %c0_31 = arith.constant 0 : index
      %c0_32 = arith.constant 0 : index
      %33 = vector.load %arg10[%c0_31, %c0_32] : memref<32x1xf32, #tpu.memory_space<vmem>>, vector<32x1xf32>
      tpu.vector_store %arg10[%c0_31, %c0_32], %32 {strides = array<i32>} : memref<32x1xf32, #tpu.memory_space<vmem>>, vector<32x1xf32>,
      %cst_33 = arith.constant -3.40282347E+38 : f32
      %34 = vector.broadcast %cst_33 : f32 to vector<32x1xf32>
      %c0_34 = arith.constant 0 : index
      %c0_35 = arith.constant 0 : index
      %35 = vector.load %arg11[%c0_34, %c0_35] : memref<32x1xf32, #tpu.memory_space<vmem>>, vector<32x1xf32>
      tpu.vector_store %arg11[%c0_34, %c0_35], %34 {strides = array<i32>} : memref<32x1xf32, #tpu.memory_space<vmem>>, vector<32x1xf32>,
      %cst_36 = arith.constant -3.40282347E+38 : f32
      %36 = vector.broadcast %cst_36 : f32 to vector<32x1xf32>
      %c0_37 = arith.constant 0 : index
      %c0_38 = arith.constant 0 : index
      %37 = vector.load %arg12[%c0_37, %c0_38] : memref<32x1xf32, #tpu.memory_space<vmem>>, vector<32x1xf32>
      tpu.vector_store %arg12[%c0_37, %c0_38], %36 {strides = array<i32>} : memref<32x1xf32, #tpu.memory_space<vmem>>, vector<32x1xf32>,
    } else {
    }
    %c0 = arith.constant 0 : index
    %c0_1 = arith.constant 0 : index
    %c0_2 = arith.constant 0 : index
    %3 = vector.load %arg2[%c0, %c0_1, %c0_2] : memref<1x32x256xf32, #tpu.memory_space<vmem>>, vector<1x32x256xf32>
    %4 = vector.shape_cast %3 : vector<1x32x256xf32> to vector<32x256xf32>
    %c0_3 = arith.constant 0 : index
    %c0_4 = arith.constant 0 : index
    %c0_5 = arith.constant 0 : index
    %5 = vector.load %arg3[%c0_3, %c0_4, %c0_5] : memref<1x32x256xf32, #tpu.memory_space<vmem>>, vector<1x32x256xf32>
    %6 = vector.shape_cast %5 : vector<1x32x256xf32> to vector<32x256xf32>
    %c0_6 = arith.constant 0 : index
    %c0_7 = arith.constant 0 : index
    %7 = vector.load %arg9[%c0_6, %c0_7] : memref<32x1xf32, #tpu.memory_space<vmem>>, vector<32x1xf32>
    %cst = arith.constant dense<0.000000e+00> : vector<32xf32>
    %8 = vector.multi_reduction <add>, %4, %cst [1] : vector<32x256xf32> to vector<32xf32>
    %9 = vector.shape_cast %8 : vector<32xf32> to vector<32x1xf32>
    %10 = arith.addf %7, %9 : vector<32x1xf32>
    %c0_8 = arith.constant 0 : index
    %c0_9 = arith.constant 0 : index
    %11 = vector.load %arg9[%c0_8, %c0_9] : memref<32x1xf32, #tpu.memory_space<vmem>>, vector<32x1xf32>
    tpu.vector_store %arg9[%c0_8, %c0_9], %10 {strides = array<i32>} : memref<32x1xf32, #tpu.memory_space<vmem>>, vector<32x1xf32>,
    %c0_10 = arith.constant 0 : index
    %c0_11 = arith.constant 0 : index
    %12 = vector.load %arg10[%c0_10, %c0_11] : memref<32x1xf32, #tpu.memory_space<vmem>>, vector<32x1xf32>
    %cst_12 = arith.constant dense<0.000000e+00> : vector<32xf32>
    %13 = vector.multi_reduction <add>, %6, %cst_12 [1] : vector<32x256xf32> to vector<32xf32>
    %14 = vector.shape_cast %13 : vector<32xf32> to vector<32x1xf32>
    %15 = arith.addf %12, %14 : vector<32x1xf32>
    %c0_13 = arith.constant 0 : index
    %c0_14 = arith.constant 0 : index
    %16 = vector.load %arg10[%c0_13, %c0_14] : memref<32x1xf32, #tpu.memory_space<vmem>>, vector<32x1xf32>
    tpu.vector_store %arg10[%c0_13, %c0_14], %15 {strides = array<i32>} : memref<32x1xf32, #tpu.memory_space<vmem>>, vector<32x1xf32>,
    %c0_15 = arith.constant 0 : index
    %c0_16 = arith.constant 0 : index
    %17 = vector.load %arg11[%c0_15, %c0_16] : memref<32x1xf32, #tpu.memory_space<vmem>>, vector<32x1xf32>
    %cst_17 = arith.constant dense<0xFF800000> : vector<32xf32>
    %18 = vector.multi_reduction <maximumf>, %4, %cst_17 [1] : vector<32x256xf32> to vector<32xf32>
    %19 = vector.shape_cast %18 : vector<32xf32> to vector<32x1xf32>
    %20 = arith.maximumf %17, %19 : vector<32x1xf32>
    %c0_18 = arith.constant 0 : index
    %c0_19 = arith.constant 0 : index
    %21 = vector.load %arg11[%c0_18, %c0_19] : memref<32x1xf32, #tpu.memory_space<vmem>>, vector<32x1xf32>
    tpu.vector_store %arg11[%c0_18, %c0_19], %20 {strides = array<i32>} : memref<32x1xf32, #tpu.memory_space<vmem>>, vector<32x1xf32>,
    %c0_20 = arith.constant 0 : index
    %c0_21 = arith.constant 0 : index
    %22 = vector.load %arg12[%c0_20, %c0_21] : memref<32x1xf32, #tpu.memory_space<vmem>>, vector<32x1xf32>
    %cst_22 = arith.constant dense<0xFF800000> : vector<32xf32>
    %23 = vector.multi_reduction <maximumf>, %6, %cst_22 [1] : vector<32x256xf32> to vector<32xf32>
    %24 = vector.shape_cast %23 : vector<32xf32> to vector<32x1xf32>
    %25 = arith.maximumf %22, %24 : vector<32x1xf32>
    %c0_23 = arith.constant 0 : index
    %c0_24 = arith.constant 0 : index
    %26 = vector.load %arg12[%c0_23, %c0_24] : memref<32x1xf32, #tpu.memory_space<vmem>>, vector<32x1xf32>
    tpu.vector_store %arg12[%c0_23, %c0_24], %25 {strides = array<i32>} : memref<32x1xf32, #tpu.memory_space<vmem>>, vector<32x1xf32>,
    %c0_i32_25 = arith.constant 0 : i32
    %27 = arith.cmpi eq, %arg1, %c0_i32_25 : i32
    %28 = arith.extui %27 : i1 to i32
    %c0_i32_26 = arith.constant 0 : i32
    %29 = arith.cmpi ne, %28, %c0_i32_26 : i32
    scf.if %29 {
      %c0_27 = arith.constant 0 : index
      %c0_28 = arith.constant 0 : index
      %30 = vector.load %arg9[%c0_27, %c0_28] : memref<32x1xf32, #tpu.memory_space<vmem>>, vector<32x1xf32>
      %c0_29 = arith.constant 0 : index
      %c0_30 = arith.constant 0 : index
      %31 = vector.load %arg10[%c0_29, %c0_30] : memref<32x1xf32, #tpu.memory_space<vmem>>, vector<32x1xf32>
      %32 = tpu.concatenate %30, %31 in 0 : vector<32x1xf32>, vector<32x1xf32> -> vector<64x1xf32>
      %cst_31 = arith.constant 3.906250e-03 : f32
      %33 = vector.broadcast %cst_31 : f32 to vector<64x1xf32>
      %34 = arith.mulf %32, %33 : vector<64x1xf32>
      %c0_32 = arith.constant 0 : index
      %c0_33 = arith.constant 0 : index
      %35 = vector.load %arg11[%c0_32, %c0_33] : memref<32x1xf32, #tpu.memory_space<vmem>>, vector<32x1xf32>
      %c0_34 = arith.constant 0 : index
      %c0_35 = arith.constant 0 : index
      %36 = vector.load %arg12[%c0_34, %c0_35] : memref<32x1xf32, #tpu.memory_space<vmem>>, vector<32x1xf32>
      %37 = tpu.concatenate %35, %36 in 0 : vector<32x1xf32>, vector<32x1xf32> -> vector<64x1xf32>
      %38 = tpu.concatenate %34, %37 in 1 : vector<64x1xf32>, vector<64x1xf32> -> vector<64x2xf32>
      %c0_36 = arith.constant 0 : index
      %c0_37 = arith.constant 0 : index
      %39 = vector.load %arg4[%c0_36, %c0_37] : memref<16x64xf32, #tpu.memory_space<vmem>>, vector<16x64xf32>
      %cst_38 = arith.constant dense<0.000000e+00> : vector<16x2xf32>
      %40 = tpu.matmul %39, %38, %cst_38 {dimension_numbers = #tpu.dot_dimension_numbers<[1], [0], [0], [1], [0, 0, 1, 1], [], []>} : vector<16x64xf32>, vector<64x2xf32>, vector<16x2xf32> -> vector<16x2xf32>
      %c0_39 = arith.constant 0 : index
      %c0_40 = arith.constant 0 : index
      %41 = vector.load %arg5[%c0_39, %c0_40] : memref<16x1xf32, #tpu.memory_space<vmem>>, vector<16x1xf32>
      %42 = vector.broadcast %41 : vector<16x1xf32> to vector<16x2xf32>
      %43 = arith.addf %40, %42 : vector<16x2xf32>
      %cst_41 = arith.constant 0.000000e+00 : f32
      %44 = vector.broadcast %cst_41 : f32 to vector<16x2xf32>
      %45 = arith.maximumf %43, %44 : vector<16x2xf32>
      %cst_42 = arith.constant dense<0.000000e+00> : vector<16xf32>
      %46 = vector.multi_reduction <add>, %45, %cst_42 [1] : vector<16x2xf32> to vector<16xf32>
      %47 = vector.shape_cast %46 : vector<16xf32> to vector<16x1xf32>
      %c0_43 = arith.constant 0 : index
      %c0_44 = arith.constant 0 : index
      %48 = vector.load %arg6[%c0_43, %c0_44] : memref<64x16xf32, #tpu.memory_space<vmem>>, vector<64x16xf32>
      %cst_45 = arith.constant dense<0.000000e+00> : vector<64x1xf32>
      %49 = tpu.matmul %48, %47, %cst_45 {dimension_numbers = #tpu.dot_dimension_numbers<[1], [0], [0], [1], [0, 0, 1, 1], [], []>} : vector<64x16xf32>, vector<16x1xf32>, vector<64x1xf32> -> vector<64x1xf32>
      %c0_46 = arith.constant 0 : index
      %c0_47 = arith.constant 0 : index
      %50 = vector.load %arg7[%c0_46, %c0_47] : memref<64x1xf32, #tpu.memory_space<vmem>>, vector<64x1xf32>
      %cst_48 = arith.constant 2.000000e+00 : f32
      %51 = vector.broadcast %cst_48 : f32 to vector<64x1xf32>
      %52 = arith.mulf %51, %50 : vector<64x1xf32>
      %53 = arith.addf %49, %52 : vector<64x1xf32>
      %cst_49 = arith.constant 0.000000e+00 : f32
      %54 = vector.broadcast %cst_49 : f32 to vector<64x1xf32>
      %55 = arith.subf %54, %53 : vector<64x1xf32>
      %56 = math.exp %55 : vector<64x1xf32>
      %cst_50 = arith.constant 1.000000e+00 : f32
      %57 = vector.broadcast %cst_50 : f32 to vector<64x1xf32>
      %58 = arith.addf %57, %56 : vector<64x1xf32>
      %cst_51 = arith.constant 1.000000e+00 : f32
      %59 = vector.broadcast %cst_51 : f32 to vector<64x1xf32>
      %60 = arith.divf %59, %58 : vector<64x1xf32>
      %c0_52 = arith.constant 0 : index
      %c0_53 = arith.constant 0 : index
      %c0_54 = arith.constant 0 : index
      %61 = vector.load %arg8[%c0_52, %c0_53, %c0_54] : memref<1x64x1xf32, #tpu.memory_space<vmem>>, vector<1x64x1xf32>
      %62 = vector.shape_cast %61 : vector<1x64x1xf32> to vector<64x1xf32>
      %63 = vector.shape_cast %60 : vector<64x1xf32> to vector<1x64x1xf32>
      tpu.vector_store %arg8[%c0_52, %c0_53, %c0_54], %63 {strides = array<i32>} : memref<1x64x1xf32, #tpu.memory_space<vmem>>, vector<1x64x1xf32>,
    } else {
    }
    return
  }
  func.func @transform_0(%arg0: i32, %arg1: i32) -> (i32, i32, i32) {
    %c0_i32 = arith.constant 0 : i32
    %c0_i32_0 = arith.constant 0 : i32
    return %arg0, %c0_i32, %arg1 : i32, i32, i32
  }
  func.func @transform_1(%arg0: i32, %arg1: i32) -> (i32, i32, i32) {
    %c0_i32 = arith.constant 0 : i32
    %c0_i32_0 = arith.constant 0 : i32
    return %arg0, %c0_i32, %arg1 : i32, i32, i32
  }
  func.func @transform_2(%arg0: i32, %arg1: i32) -> (i32, i32) {
    %c0_i32 = arith.constant 0 : i32
    %c0_i32_0 = arith.constant 0 : i32
    %c0_i32_1 = arith.constant 0 : i32
    return %c0_i32, %c0_i32_0 : i32, i32
  }
  func.func @transform_3(%arg0: i32, %arg1: i32) -> (i32, i32) {
    %c0_i32 = arith.constant 0 : i32
    %c0_i32_0 = arith.constant 0 : i32
    %c0_i32_1 = arith.constant 0 : i32
    return %c0_i32, %c0_i32_0 : i32, i32
  }
  func.func @transform_4(%arg0: i32, %arg1: i32) -> (i32, i32) {
    %c0_i32 = arith.constant 0 : i32
    %c0_i32_0 = arith.constant 0 : i32
    %c0_i32_1 = arith.constant 0 : i32
    return %c0_i32, %c0_i32_0 : i32, i32
  }
  func.func @transform_5(%arg0: i32, %arg1: i32) -> (i32, i32) {
    %c0_i32 = arith.constant 0 : i32
    %c0_i32_0 = arith.constant 0 : i32
    %c0_i32_1 = arith.constant 0 : i32
    return %c0_i32, %c0_i32_0 : i32, i32
  }
  func.func @transform_6(%arg0: i32, %arg1: i32) -> (i32, i32, i32) {
    %c0_i32 = arith.constant 0 : i32
    %c0_i32_0 = arith.constant 0 : i32
    %c0_i32_1 = arith.constant 0 : i32
    return %arg0, %c0_i32, %c0_i32_0 : i32, i32, i32
  }
}

</mosaic_0001>

<bundles_post_ra>
// kernel: tpu_custom_call.1
= control target key start
LH: loop header
LB: loop body
LE: loop exit
PB: predicated region body
PF: predicated region fallthrough
CT: control target
= control target key end

     0   :  { %11 = vsyncpa [#allocation7], 0  ;;  %s1478_s0 = inlined_call_operand.vmem [shape: f32[2,32,256], index: 0, kind: input, shape index: {}]   ;;  %s1479_s1 = inlined_call_operand.hbm [shape: f32[2,32,256], index: 1, kind: input, shape index: {}]   ;;  %s1480_s2 = inlined_call_operand.vmem [shape: f32[16,64], index: 2, kind: input, shape index: {}]   ;;  %s1481_s3 = inlined_call_operand.vmem [shape: f32[16,1], index: 3, kind: input, shape index: {}]   ;;  %s1482_s4 = inlined_call_operand.vmem [shape: f32[64,16], index: 4, kind: input, shape index: {}]   ;;  %s1483_s5 = inlined_call_operand.vmem [shape: f32[64,1], index: 5, kind: input, shape index: {}]   ;;  %s1484_s6 = inlined_call_operand.vmem [shape: f32[2,64,1], index: 6, kind: output, shape index: {}]  }
   0x1   :  { %13 = vsyncpa [#allocation7 + $0x1], 0  ;;  %s1197_s21 = smov 0   ;;  %s1199_s22 = smov 0  }
   0x2   :  { %s1201_s23 = smov 0   ;;  %s1203_s24 = smov 0  }
   0x3   :  { %s1205_s25 = smov 0   ;;  %s1207_s26 = smov 0  }
   0x4 LB: > { %s927_s27 = sadd.s32 4294967295, %s1154_s26   ;;  %s31_s28 = sadd.s32 1, %s1150_s25  ;;  %s1154_s26 = sphi %s1207_s26, %s19_s26   ;;  %s1150_s25 = sphi %s1205_s25, %s1495_s25   ;;  %s1146_s24 = sphi %s1203_s24, %s1494_s24   ;;  %s1142_s23 = sphi %s1201_s23, %s1493_s23   ;;  %s1138_s22 = sphi %s1199_s22, %s1492_s22   ;;  %s1134_s21 = sphi %s1197_s21, %s1491_s21  }
   0x5   : > { %p33_p0 = scmp.ge.s32.totalorder %s31_s28, 2  ;;  %s68_s29 = sadd.s32 1, %s1142_s23 }
   0x6   : > { %p75_p1 = scmp.ne.s32.totalorder %s1142_s23, %s1138_s22  ;;  %p76_p2 = scmp.eq.s32.totalorder %s1154_s26, 0 }
   0x7   : > { %s1497_s28 = smov (%p33_p0, %s31_s28), 0  ;;  %p81_p4 = scmp.ne.s32.totalorder %s1138_s22, %s1134_s21 }
   0x8   : > { %p1233_p3 = por %p76_p2, %p75_p1  ;;  %s63_s7 = ssub.s32 %s1150_s25, %s1497_s28 }
   0x9   : > { %p82_p5 = scmp.eq.s32.totalorder %s927_s27, 0  ;;  %p66_p6 = scmp.eq.s32.totalorder %s63_s7, 0 }
   0xa   : > { %p965_p8 = scmp.lt.s32.totalorder %s1154_s26, 2  ;;  %s240_s10 = sand.u32 1, %s1142_s23  }
   0xb   : > { %p1240_p7 = por %p82_p5, %p81_p4  ;;  %s952_s11 = sshll.u32 %s1150_s25, 6 }
   0xc   : > { %s1246_s9 = scalar_select %p66_p6, %s1142_s23, %s68_s29  }
   0xd   : > { %s931_s12 = sshll.u32 %s240_s10, 6  ;;  %s251_s15 = scalar_lea.hbm %s1479_s1, %s952_s11 }
   0xe   : > { %s252_s16 = sshll.u32 %s251_s15, 4  ;;  %s244_s17 = scalar_lea.vmem [#allocation6], %s931_s12  ;;  %s253_s16 = int_to_ptr.hbm [resolvable:$true] %s252_s16 }
   0xf   : > { %s254_s18 = sshll.u32 %s244_s17, 4  ;;  %p962_p9 = pnand %p965_p8, %p1233_p3  ;;  %s255_s18 = int_to_ptr.vmem [resolvable:$true] %s254_s18 }
  0x10   : > { %p934_p10 = scmp.ge.s32.totalorder %s1154_s26, 1  ;;  %p262_p11 = scmp.lt.s32.totalorder %s1154_s26, 3 }
  0x11   : > { %s241_s19 = scalar_lea.sflag [#allocation7], %s240_s10  ;;  %s1156_s20 = smov 256  }
  0x12   : > { %s1157_s21 = smov 16   ;;  %p263_p12 = pnand %p934_p10, %p262_p11 }
  0x13   : > { %964 = dma.hbm_to_vmem [thread:$0]  (!%p962_p9), %s253_s16, 1024, %s255_s18, %s241_s19, %s1156_s20, %s1156_s20, %s1157_s21  }
  0x14   : > { %266 = sbr.rel (%p263_p12) target bundleno = 738 (0x2e2), region = 44  ;;  %s268_s27 = sand.u32 (!%p263_p12), 1, %s1138_s22  }
  0x15   : > { %s935_s29 = sshll.u32 (!%p263_p12), %s268_s27, 6  ;;  %s269_s7 = scalar_lea.sflag (!%p263_p12), [#allocation7], %s268_s27 }
  0x16   : > { %s272_s11 = scalar_lea.vmem (!%p263_p12), [#allocation6], %s935_s29 }
  0x19   : > { %1129 = dma.done.wait (%p1240_p7), %s269_s7, 1024  }
  0x1a   : > { %1131 = vsyncadd (%p1240_p7), %s269_s7, 4294966272  ;;  %p312_p13 = scmp.lt.s32.totalorder %s1146_s24, 1  ;;  %v362_v0 = vld [vmem:[%s272_s11 + $0x30] sm:$0xff]  ;;  %v363_v1 = vld [vmem:[%s272_s11 + $0x38] sm:$0xff]  ;;  %vm331_vm0 = vcmask 7168   ;;  %v1159_v36 = vmov 0.0  }
  0x1b   : > { %v358_v2 = vld [vmem:[%s272_s11 + $0x10] sm:$0xff]  ;;  %v450_v3 = vmax.f32 %v362_v0, %v363_v1  ;;  %v359_v4 = vld [vmem:[%s272_s11 + $0x18] sm:$0xff]  ;;  %v360_v9 = vld [vmem:[%s272_s11 + $0x20] sm:$0xff]  ;;  %v1158_v22 = vmov -3.4028235e+38   ;;  %v402_v25 = vadd.f32 %v363_v1, %v362_v0  ;;  %339 = vst.msk [vmem:[#allocation3 + $0x18] sm:$0xff] %vm331_vm0, %v1159_v36 }
  0x1c   : > { %s1499_s24 = smov (!%p312_p13, %s1146_s24), 1  ;;  %v444_v7 = vmax.f32 %v358_v2, %v359_v4  ;;  %v361_v10 = vld [vmem:[%s272_s11 + $0x28] sm:$0xff]  ;;  %v356_v11 = vld [vmem:[%s272_s11] sm:$0xff]  ;;  %347 = vst.msk [vmem:[#allocation5 + $0x18] sm:$0xff] %vm331_vm0, %v1158_v22  ;;  %v396_v28 = vadd.f32 %v359_v4, %v358_v2  ;;  %s1160_s8 = smov 1   ;;  %vm542_vm1 = vcmask 523264  }
  0x1d   : > { %s953_s30 = sshll.u32 %s1499_s24, 6  ;;  %451 = vmax.xlane.f32.xlu0 %v450_v3  ;;  %v357_v12 = vld [vmem:[%s272_s11 + $0x8] sm:$0xff]  ;;  %v447_v15 = vmax.f32 %v360_v9, %v361_v10  ;;  %340 = vst.msk [vmem:[#allocation4] sm:$0xff] %vm331_vm0, %v1158_v22  ;;  %v399_v26 = vadd.f32 %v361_v10, %v360_v9  ;;  %vm574_vm2 = vcmask 15360   ;;  %vm605_vm3 = vcmask 130048  }
  0x1e   : > { %s319_s13 = scalar_lea.vmem %s1478_s0, %s953_s30  ;;  %445 = vmax.xlane.f32.xlu1 %v444_v7  ;;  %v441_v16 = vmax.f32 %v356_v11, %v357_v12  ;;  %341 = vst.msk [vmem:[#allocation4 + $0x8] sm:$0xff] %vm331_vm0, %v1158_v22  ;;  %v393_v27 = vadd.f32 %v357_v12, %v356_v11  ;;  %s1396_s7 = scalar_lea.vmem %s1484_s6, %s953_s30 }
  0x1f   : > { %v354_v5 = vld [vmem:[%s319_s13 + $0x30] sm:$0xff]  ;;  %v355_v6 = vld [vmem:[%s319_s13 + $0x38] sm:$0xff]  ;;  %v352_v13 = vld [vmem:[%s319_s13 + $0x20] sm:$0xff]  ;;  %342 = vst.msk [vmem:[#allocation4 + $0x10] sm:$0xff] %vm331_vm0, %v1158_v22 }
  0x20   : > { %v426_v8 = vmax.f32 %v354_v5, %v355_v6  ;;  %v353_v14 = vld [vmem:[%s319_s13 + $0x28] sm:$0xff]  ;;  %v350_v18 = vld [vmem:[%s319_s13 + $0x10] sm:$0xff]  ;;  %v351_v19 = vld [vmem:[%s319_s13 + $0x18] sm:$0xff]  ;;  %343 = vst.msk [vmem:[#allocation4 + $0x18] sm:$0xff] %vm331_vm0, %v1158_v22  ;;  %v377_v32 = vadd.f32 %v355_v6, %v354_v5 }
  0x21   : > { %v423_v17 = vmax.f32 %v352_v13, %v353_v14  ;;  %v348_v20 = vld [vmem:[%s319_s13] sm:$0xff]  ;;  %v349_v21 = vld [vmem:[%s319_s13 + $0x8] sm:$0xff]  ;;  %v420_v23 = vmax.f32 %v350_v18, %v351_v19  ;;  %344 = vst.msk [vmem:[#allocation5] sm:$0xff] %vm331_vm0, %v1158_v22  ;;  %v371_v29 = vadd.f32 %v351_v19, %v350_v18  ;;  %v374_v30 = vadd.f32 %v353_v14, %v352_v13 }
  0x22   : > { %427 = vmax.xlane.f32.xlu2 %v426_v8  ;;  %v417_v24 = vmax.f32 %v348_v20, %v349_v21  ;;  %345 = vst.msk [vmem:[#allocation5 + $0x8] sm:$0xff] %vm331_vm0, %v1158_v22  ;;  %v368_v31 = vadd.f32 %v349_v21, %v348_v20  ;;  %v392_v54 = vld [vmem:[#allocation3 + $0x18] sm:$0xff] }
  0x23   : > { %346 = vst.msk [vmem:[#allocation5 + $0x10] sm:$0xff] %vm331_vm0, %v1158_v22  ;;  %v440_v33 = vld [vmem:[#allocation5 + $0x18] sm:$0xff] }
  0x24   : > { %332 = vst.msk [vmem:[#allocation2] sm:$0xff] %vm331_vm0, %v1159_v36  ;;  %v413_v53 = vld [vmem:[#allocation4] sm:$0xff] }
  0x25   : > { %448 = vmax.xlane.f32.xlu0 %v447_v15  ;;  %333 = vst.msk [vmem:[#allocation2 + $0x8] sm:$0xff] %vm331_vm0, %v1159_v36  ;;  %v414_v52 = vld [vmem:[#allocation4 + $0x8] sm:$0xff] }
  0x26   : > { %442 = vmax.xlane.f32.xlu1 %v441_v16  ;;  %334 = vst.msk [vmem:[#allocation2 + $0x10] sm:$0xff] %vm331_vm0, %v1159_v36  ;;  %v415_v45 = vld [vmem:[#allocation4 + $0x10] sm:$0xff] }
  0x27   : > { %v416_v35 = vld [vmem:[#allocation4 + $0x18] sm:$0xff]  ;;  %335 = vst.msk [vmem:[#allocation2 + $0x18] sm:$0xff] %vm331_vm0, %v1159_v36 }
  0x28   : > { %v437_v44 = vld [vmem:[#allocation5] sm:$0xff]  ;;  %336 = vst.msk [vmem:[#allocation3] sm:$0xff] %vm331_vm0, %v1159_v36 }
  0x29   : > { %v438_v34 = vld [vmem:[#allocation5 + $0x8] sm:$0xff]  ;;  %337 = vst.msk [vmem:[#allocation3 + $0x8] sm:$0xff] %vm331_vm0, %v1159_v36 }
  0x2a   : > { %424 = vmax.xlane.f32.xlu2 %v423_v17  ;;  %v439_v43 = vld [vmem:[#allocation5 + $0x10] sm:$0xff]  ;;  %338 = vst.msk [vmem:[#allocation3 + $0x10] sm:$0xff] %vm331_vm0, %v1159_v36 }
  0x2c   : > { %v365_v18 = vld [vmem:[#allocation2 + $0x8] sm:$0xff] }
  0x2d   : > { %421 = vmax.xlane.f32.xlu0 %v420_v23  ;;  %v366_v19 = vld [vmem:[#allocation2 + $0x10] sm:$0xff] }
  0x2e   : > { %418 = vmax.xlane.f32.xlu1 %v417_v24 }
  0x2f   : > { %v389_v7 = vld [vmem:[#allocation3] sm:$0xff] }
  0x30   : > { %v390_v8 = vld [vmem:[#allocation3 + $0x8] sm:$0xff] }
  0x31   : > { %v391_v6 = vld [vmem:[#allocation3 + $0x10] sm:$0xff] }
  0x32   : > { %403 = vadd.xlane.f32.xlu2 %v402_v25  ;;  %v364_v25 = vld [vmem:[#allocation2] sm:$0xff] }
  0x35   : > { %400 = vadd.xlane.f32.xlu0 %v399_v26 }
  0x36   : > { %397 = vadd.xlane.f32.xlu1 %v396_v28 }
  0x3a   : > { %394 = vadd.xlane.f32.xlu2 %v393_v27  ;;  %v367_v27 = vld [vmem:[#allocation2 + $0x18] sm:$0xff] }
  0x3d   : > { %378 = vadd.xlane.f32.xlu0 %v377_v32  ;;  %v1161_v32 = vmov 0  }
  0x3e   : > { %375 = vadd.xlane.f32.xlu1 %v374_v30  ;;  %v530_v30 = vld [vmem:[%s1481_s3] sm:$0xff]  ;;  %1041 = vset.pattern.permute.xlu0 %v1161_v32 }
  0x3f   : > { %1040 = vset.pattern.permute.xlu2 %v1161_v32  ;;  %v595_v32 = vld [vmem:[%s1483_s5 + $0x30] sm:$0xff] }
  0x42   : > { %372 = vadd.xlane.f32.xlu2 %v371_v29 }
  0x46   : > { %369 = vadd.xlane.f32.xlu1 %v368_v31  ;;  %v531_v31 = vld [vmem:[%s1481_s3 + $0x8] sm:$0xff] }
  0x90   : > { %v452_v37 = vpop.xlane.xlu0 %451 }
  0x91   : > { %v456_v38 = vmax.f32 %v440_v33, %v452_v37  ;;  %v446_v39 = vpop.xlane.xlu1 %445 }
  0x92   : > { %v454_v41 = vmax.f32 %v438_v34, %v446_v39 }
  0x93   : > { %460 = vst.msk [vmem:[#allocation5 + $0x18] sm:$0xff] %vm331_vm0, %v456_v38 }
  0x94   : > { %458 = vst.msk [vmem:[#allocation5 + $0x8] sm:$0xff] %vm331_vm0, %v454_v41 }
  0x95   : > { %v428_v40 = vpop.xlane.xlu2 %427 }
  0x96   : > { %v432_v42 = vmax.f32 %v416_v35, %v428_v40 }
  0x98   : > { %436 = vst.msk [vmem:[#allocation4 + $0x18] sm:$0xff] %vm331_vm0, %v432_v42  ;;  %v449_v46 = vpop.xlane.xlu0 %448 }
  0x99   : > { %v455_v47 = vmax.f32 %v439_v43, %v449_v46  ;;  %v443_v48 = vpop.xlane.xlu1 %442 }
  0x9a   : > { %v453_v50 = vmax.f32 %v437_v44, %v443_v48  ;;  %v487_v61 = vld [vmem:[#allocation5 + $0x18] sm:$0xff] }
  0x9b   : > { %459 = vst.msk [vmem:[#allocation5 + $0x10] sm:$0xff] %vm331_vm0, %v455_v47  ;;  %v485_v2 = vld [vmem:[#allocation5 + $0x8] sm:$0xff] }
  0x9c   : > { %457 = vst.msk [vmem:[#allocation5] sm:$0xff] %vm331_vm0, %v453_v50 }
  0x9d   : > { %v425_v49 = vpop.xlane.xlu2 %424 }
  0x9e   : > { %v431_v51 = vmax.f32 %v415_v45, %v425_v49 }
  0x9f   : > { %v483_v62 = vld [vmem:[#allocation4 + $0x18] sm:$0xff] }
  0xa0   : > { %435 = vst.msk [vmem:[#allocation4 + $0x10] sm:$0xff] %vm331_vm0, %v431_v51  ;;  %v422_v55 = vpop.xlane.xlu0 %421 }
  0xa1   : > { %v430_v56 = vmax.f32 %v414_v52, %v422_v55  ;;  %v419_v57 = vpop.xlane.xlu1 %418 }
  0xa2   : > { %v429_v59 = vmax.f32 %v413_v53, %v419_v57  ;;  %v486_v60 = vld [vmem:[#allocation5 + $0x10] sm:$0xff] }
  0xa3   : > { %434 = vst.msk [vmem:[#allocation4 + $0x8] sm:$0xff] %vm331_vm0, %v430_v56  ;;  %v1020_v0 = vpack.i.bf16 %v486_v60, %v487_v61  ;;  %v484_v1 = vld [vmem:[#allocation5] sm:$0xff] }
  0xa4   : > { %433 = vst.msk [vmem:[#allocation4] sm:$0xff] %vm331_vm0, %v429_v59  ;;  %v1025_v3 = vpack.i.bf16 %v484_v1, %v485_v2 }
  0xa5   : > { %v404_v58 = vpop.xlane.xlu2 %403  ;;  %1021 = vrot.lane.b32.xlu0 %v1020_v0, %s1160_s8 }
  0xa6   : > { %v408_v63 = vadd.f32 %v404_v58, %v392_v54  ;;  %1026 = vrot.lane.b32.xlu2 %v1025_v3, %s1160_s8 }
  0xa7   : > { %v482_v4 = vld [vmem:[#allocation4 + $0x10] sm:$0xff] }
  0xa8   : > { %v1030_v5 = vpack.i.bf16 %v482_v4, %v483_v62  ;;  %412 = vst.msk [vmem:[#allocation3 + $0x18] sm:$0xff] %vm331_vm0, %v408_v63  ;;  %v401_v9 = vpop.xlane.xlu0 %400  ;;  %v528_v4 = vld [vmem:[%s1480_s2] sm:$0xff] }
  0xa9   : > { %v398_v11 = vpop.xlane.xlu1 %397  ;;  %v407_v12 = vadd.f32 %v401_v9, %v391_v6  ;;  %v529_v6 = vld [vmem:[%s1480_s2 + $0x8] sm:$0xff] }
  0xaa   : > { %1031 = vrot.lane.b32.xlu1 %v1030_v5, %s1160_s8  ;;  %v481_v13 = vld [vmem:[#allocation4 + $0x8] sm:$0xff]  ;;  %v406_v15 = vadd.f32 %v398_v11, %v390_v8 }
  0xab   : > { %v480_v16 = vld [vmem:[#allocation4] sm:$0xff]  ;;  %411 = vst.msk [vmem:[#allocation3 + $0x10] sm:$0xff] %vm331_vm0, %v407_v12 }
  0xac   : > { %v1035_v17 = vpack.i.bf16 %v480_v16, %v481_v13  ;;  %410 = vst.msk [vmem:[#allocation3 + $0x8] sm:$0xff] %vm331_vm0, %v406_v15 }
  0xad   : > { %v395_v10 = vpop.xlane.xlu2 %394 }
  0xae   : > { %v405_v14 = vadd.f32 %v395_v10, %v389_v7  ;;  %1036 = vrot.lane.b32.xlu0 %v1035_v17, %s1160_s8  ;;  %539 = vperm.xlu2 %1040, %v531_v31   ;;  %v592_v31 = vld [vmem:[%s1483_s5 + $0x18] sm:$0xff] }
  0xaf   : > { %v471_v33 = vld [vmem:[#allocation3 + $0x18] sm:$0xff] }
  0xb0   : > { %409 = vst.msk [vmem:[#allocation3] sm:$0xff] %vm331_vm0, %v405_v14  ;;  %v379_v28 = vpop.xlane.xlu0 %378  ;;  %v479_v40 = vmul.f32 0.00390625, %v471_v33  ;;  %v590_v33 = vld [vmem:[%s1483_s5 + $0x8] sm:$0xff] }
  0xb1   : > { %v376_v21 = vpop.xlane.xlu1 %375  ;;  %v383_v29 = vadd.f32 %v379_v28, %v367_v27  ;;  %v589_v27 = vld [vmem:[%s1483_s5] sm:$0xff] }
  0xb2   : > { %v382_v23 = vadd.f32 %v376_v21, %v366_v19  ;;  %v470_v36 = vld [vmem:[#allocation3 + $0x10] sm:$0xff]  ;;  %v597_v28 = vmul.f32 2.0, %v589_v27 }
  0xb3   : > { %388 = vst.msk [vmem:[#allocation2 + $0x18] sm:$0xff] %vm331_vm0, %v383_v29  ;;  %v469_v37 = vld [vmem:[#allocation3 + $0x8] sm:$0xff]  ;;  %v478_v44 = vmul.f32 0.00390625, %v470_v36  ;;  %v587_v21 = vld [vmem:[%s1482_s4 + $0x30] sm:$0xff]  ;;  %v603_v36 = vmul.f32 2.0, %v595_v32 }
  0xb4   : > { %387 = vst.msk [vmem:[#allocation2 + $0x10] sm:$0xff] %vm331_vm0, %v382_v23  ;;  %v477_v45 = vmul.f32 0.00390625, %v469_v37  ;;  %v585_v23 = vld [vmem:[%s1482_s4 + $0x20] sm:$0xff] }
  0xb5   : > { %v373_v20 = vpop.xlane.xlu2 %372 }
  0xb6   : > { %v381_v22 = vadd.f32 %v373_v20, %v365_v18  ;;  %534 = vperm.xlu0 %1041, %v530_v30   ;;  %v581_v18 = vld [vmem:[%s1482_s4] sm:$0xff]  ;;  %v584_v20 = vld [vmem:[%s1482_s4 + $0x18] sm:$0xff] }
  0xb7   : > { %v468_v41 = vld [vmem:[#allocation3] sm:$0xff] }
  0xb8   : > { %386 = vst.msk [vmem:[#allocation2 + $0x8] sm:$0xff] %vm331_vm0, %v381_v22  ;;  %v476_v49 = vmul.f32 0.00390625, %v468_v41  ;;  %v582_v22 = vld [vmem:[%s1482_s4 + $0x8] sm:$0xff] }
  0xb9   : > { %v370_v24 = vpop.xlane.xlu1 %369 }
  0xba   : > { %v380_v26 = vadd.f32 %v370_v24, %v364_v25  ;;  %v467_v50 = vld [vmem:[#allocation2 + $0x18] sm:$0xff]  ;;  %v583_v25 = vld [vmem:[%s1482_s4 + $0x10] sm:$0xff] }
  0xbb   : > { %v466_v53 = vld [vmem:[#allocation2 + $0x10] sm:$0xff]  ;;  %v475_v57 = vmul.f32 0.00390625, %v467_v50  ;;  %v588_v24 = vld [vmem:[%s1482_s4 + $0x38] sm:$0xff] }
  0xbc   : > { %385 = vst.msk [vmem:[#allocation2] sm:$0xff] %vm331_vm0, %v380_v26  ;;  %v474_v61 = vmul.f32 0.00390625, %v466_v53  ;;  %v586_v26 = vld [vmem:[%s1482_s4 + $0x28] sm:$0xff] }
  0xbf   : > { %v465_v58 = vld [vmem:[#allocation2 + $0x8] sm:$0xff] }
  0xc0   : > { %v473_v1 = vmul.f32 0.00390625, %v465_v58 }
  0xc3   : > { %v464_v62 = vld [vmem:[#allocation2] sm:$0xff] }
  0xc4   : > { %v472_v3 = vmul.f32 0.00390625, %v464_v62 }
 0x100   : > { %v1027_v34 = vpop.permute.xlu2 %1026 }
 0x101   : > { %v1028_v42 = vunpack.i.l.bf16 %v1027_v34  ;;  %v1029_v47 = vunpack.i.h.bf16 %v1027_v34 }
 0x103   : > { %v525_v52 = vsel %vm331_vm0, %v477_v45, %v1028_v42  ;;  %v524_v56 = vsel %vm331_vm0, %v476_v49, %v1029_v47  ;;  %v593_v47 = vld [vmem:[%s1483_s5 + $0x20] sm:$0xff]  ;;  %v591_v49 = vld [vmem:[%s1483_s5 + $0x10] sm:$0xff] }
 0x108   : > { %v540_v12 = vpop.permute.xlu2 %539 }
 0x117   : > { %v1022_v35 = vpop.permute.xlu0 %1021 }
 0x118   : > { %v1024_v38 = vunpack.i.h.bf16 %v1022_v35  ;;  %v1023_v39 = vunpack.i.l.bf16 %v1022_v35  ;;  %v600_v35 = vmul.f32 2.0, %v592_v31 }
 0x11a   : > { %v527_v43 = vsel %vm331_vm0, %v479_v40, %v1023_v39  ;;  %v526_v48 = vsel %vm331_vm0, %v478_v44, %v1024_v38  ;;  %v598_v38 = vmul.f32 2.0, %v590_v33 }
 0x11b   : > { %557 = vmatpush.msra.mxu0 %v527_v43 }
 0x11c   : > { %v1032_v46 = vpop.permute.xlu1 %1031 }
 0x11d   : > { %558 = vmatpush.msra.mxu0 %v526_v48  ;;  %v1033_v51 = vunpack.i.l.bf16 %v1032_v46  ;;  %v1034_v54 = vunpack.i.h.bf16 %v1032_v46  ;;  %v596_v48 = vld [vmem:[%s1483_s5 + $0x38] sm:$0xff] }
 0x11f   : > { %559 = vmatpush.msra.mxu0 %v525_v52  ;;  %v523_v60 = vsel %vm331_vm0, %v475_v57, %v1033_v51  ;;  %v522_v0 = vsel %vm331_vm0, %v474_v61, %v1034_v54  ;;  %v599_v57 = vmul.f32 2.0, %v591_v49 }
 0x120   : > { %v1037_v55 = vpop.permute.xlu0 %1036 }
 0x121   : > { %560 = vmatpush.msra.mxu0 %v524_v56  ;;  %v1038_v59 = vunpack.i.l.bf16 %v1037_v55  ;;  %v1039_v63 = vunpack.i.h.bf16 %v1037_v55  ;;  %v601_v55 = vmul.f32 2.0, %v593_v47  ;;  %v604_v56 = vmul.f32 2.0, %v596_v48 }
 0x123   : > { %561 = vmatpush.msra.mxu0 %v523_v60  ;;  %v521_v2 = vsel %vm331_vm0, %v473_v1, %v1038_v59  ;;  %v520_v5 = vsel %vm331_vm0, %v472_v3, %v1039_v63 }
 0x125   : > { %562 = vmatpush.msra.mxu0 %v522_v0 }
 0x127   : > { %563 = vmatpush.msra.mxu0 %v521_v2  ;;  %v594_v2 = vld [vmem:[%s1483_s5 + $0x28] sm:$0xff] }
 0x128   : > { %v535_v7 = vpop.permute.xlu0 %534 }
 0x129   : > { %564 = vmatpush.msra.mxu0 %v520_v5 }
 0x12a   : > { %940 = vmatmul.msk.f32.vlgmr.msra.gmra.mxu0 %vm542_vm1, %v528_v4 }
 0x132   : > { %941 = vmatmul.msk.f32.gmra.mxu0 %vm542_vm1, %v529_v6 }
 0x1a7   : > { %v566_v8 = vpop.f32.mrf.mxu0 }
 0x1a8   : > { %v567_v9 = vadd.f32 %v566_v8, %v535_v7 }
 0x1aa   : > { %v572_v10 = vmax.f32 %v567_v9, 0.0 }
 0x1ac   : > { %v575_v11 = vsel %vm574_vm2, %v572_v10, 0.0 }
 0x1ad   : > { %576 = vadd.xlane.f32.xlu1 %v575_v11  ;;  %v602_v11 = vmul.f32 2.0, %v594_v2 }
 0x1af   : > { %v569_v13 = vpop.f32.mrf.mxu0 }
 0x1b0   : > { %v570_v14 = vadd.f32 %v569_v13, %v540_v12 }
 0x1b2   : > { %v573_v15 = vmax.f32 %v570_v14, 0.0 }
 0x1b4   : > { %v578_v16 = vsel %vm574_vm2, %v573_v15, 0.0 }
 0x1b5   : > { %579 = vadd.xlane.f32.xlu2 %v578_v16 }
 0x220   : > { %v577_v19 = vpop.xlane.xlu1 %576 }
 0x228   : > { %v580_v17 = vpop.xlane.xlu2 %579 }
 0x229   : > { %644 = vmatpush.msra.mxu1 %v580_v17  ;;  %955 = vmatpush.msra.mxu2 %v580_v17 }
 0x22a   : > { %956 = vmatpush.msra.mxu3 %v580_v17 }
 0x22b   : > { %645 = vmatpush.msra.mxu1 %v577_v19  ;;  %957 = vmatpush.msra.mxu2 %v577_v19 }
 0x22c   : > { %958 = vmatpush.msra.mxu3 %v577_v19  ;;  %942 = vmatmul.msk.f32.vlgmr.msra.gmra.mxu1 %vm605_vm3, %v581_v18 }
 0x22d   : > { %945 = vmatmul.msk.f32.vlgmr.msra.gmra.mxu2 %vm605_vm3, %v584_v20  ;;  %948 = vmatmul.msk.f32.vlgmr.msra.gmra.mxu3 %vm605_vm3, %v587_v21 }
 0x234   : > { %943 = vmatmul.msk.f32.gmra.mxu1 %vm605_vm3, %v582_v22 }
 0x235   : > { %946 = vmatmul.msk.f32.gmra.mxu2 %vm605_vm3, %v585_v23  ;;  %949 = vmatmul.msk.f32.gmra.mxu3 %vm605_vm3, %v588_v24 }
 0x23c   : > { %944 = vmatmul.msk.f32.gmra.mxu1 %vm605_vm3, %v583_v25 }
 0x23d   : > { %947 = vmatmul.msk.f32.gmra.mxu2 %vm605_vm3, %v586_v26 }
 0x2a9   : > { %v647_v29 = vpop.f32.mrf.mxu1 }
 0x2aa   : > { %v648_v30 = vadd.f32 %v647_v29, %v597_v28 }
 0x2ac   : > { %v671_v34 = vsub.f32 0.0, %v648_v30 }
 0x2ae   : > { %v679_v37 = vmul.f32 1.442695, %v671_v34 }
 0x2b0   : > { %1042 = vpow2.f32 %v679_v37  ;;  %v656_v39 = vpop.f32.mrf.mxu2  ;;  %v665_v40 = vpop.f32.mrf.mxu3 }
 0x2b1   : > { %v657_v41 = vadd.f32 %v656_v39, %v600_v35  ;;  %v666_v42 = vadd.f32 %v665_v40, %v603_v36  ;;  %v650_v43 = vpop.f32.mrf.mxu1 }
 0x2b2   : > { %v651_v44 = vadd.f32 %v650_v43, %v598_v38 }
 0x2b3   : > { %v674_v45 = vsub.f32 0.0, %v657_v41  ;;  %v677_v46 = vsub.f32 0.0, %v666_v42 }
 0x2b4   : > { %v672_v50 = vsub.f32 0.0, %v651_v44 }
 0x2b5   : > { %v685_v51 = vmul.f32 1.442695, %v674_v45  ;;  %v691_v52 = vmul.f32 1.442695, %v677_v46 }
 0x2b6   : > { %v1043_v53 = vpop.eup %1042  ;;  %v681_v54 = vmul.f32 1.442695, %v672_v50 }
 0x2b7   : > { %v695_v58 = vadd.f32 1.0, %v1043_v53  ;;  %1044 = vpow2.f32 %v685_v51 }
 0x2b8   : > { %1046 = vpow2.f32 %v691_v52  ;;  %v659_v59 = vpop.f32.mrf.mxu2  ;;  %v668_v60 = vpop.f32.mrf.mxu3 }
 0x2b9   : > { %1048 = vrcp.f32 %v695_v58  ;;  %v653_v61 = vpop.f32.mrf.mxu1  ;;  %v660_v62 = vadd.f32 %v659_v59, %v601_v55  ;;  %v669_v63 = vadd.f32 %v668_v60, %v604_v56  ;;  %v712_v19 = vand.u32 2147483647, %v695_v58 }
 0x2ba   : > { %1050 = vpow2.f32 %v681_v54  ;;  %v654_v0 = vadd.f32 %v653_v61, %v599_v57  ;;  %v714_v20 = vand.u32 2147483648, %v695_v58  ;;  %vm708_vm4 = vweird.f32 %v695_v58 }
 0x2bb   : > { %v675_v1 = vsub.f32 0.0, %v660_v62  ;;  %v678_v4 = vsub.f32 0.0, %v669_v63  ;;  %vm713_vm7 = vcmp.eq.f32.partialorder %v712_v19, 8.507059e+37 }
 0x2bc   : > { %v673_v7 = vsub.f32 0.0, %v654_v0  ;;  %v715_v29 = vor.u32 1.1754944e-38, %v714_v20 }
 0x2bd   : > { %v1045_v3 = vpop.eup %1044  ;;  %v687_v10 = vmul.f32 1.442695, %v675_v1  ;;  %v693_v15 = vmul.f32 1.442695, %v678_v4 }
 0x2be   : > { %v1047_v5 = vpop.eup %1046  ;;  %v1380_v6 = vadd.f32 1.0, %v1045_v3  ;;  %v683_v18 = vmul.f32 1.442695, %v673_v7 }
 0x2bf   : > { %v1049_v8 = vpop.eup %1048  ;;  %v1382_v9 = vadd.f32 1.0, %v1047_v5 }
 0x2c0   : > { %v1051_v12 = vpop.eup %1050  ;;  %v704_v13 = vmul.f32 %v1049_v8, %v695_v58  ;;  %1052 = vrcp.f32 %v1380_v6  ;;  %v662_v14 = vpop.f32.mrf.mxu2  ;;  %vm709_vm5 = vweird.f32 %v1049_v8  ;;  %v757_v23 = vand.u32 2147483647, %v1380_v6 }
 0x2c1   : > { %1054 = vrcp.f32 %v1382_v9  ;;  %v1386_v17 = vadd.f32 1.0, %v1051_v12  ;;  %v663_v21 = vadd.f32 %v662_v14, %v602_v11  ;;  %v759_v26 = vand.u32 2147483648, %v1380_v6  ;;  %vm710_vm6 = vmor %vm708_vm4, %vm709_vm5 }
 0x2c2   : > { %v705_v16 = vsub.f32 1.0, %v704_v13  ;;  %1056 = vpow2.f32 %v687_v10  ;;  %vm753_vm8 = vweird.f32 %v1380_v6  ;;  %v804_v33 = vand.u32 2147483648, %v1382_v9 }
 0x2c3   : > { %1058 = vrcp.f32 %v1386_v17  ;;  %v676_v27 = vsub.f32 0.0, %v663_v21  ;;  %vm798_vm9 = vweird.f32 %v1382_v9  ;;  %v802_v38 = vand.u32 2147483647, %v1382_v9 }
 0x2c4   : > { %v706_v22 = vmul.f32 %v1049_v8, %v705_v16  ;;  %1060 = vpow2.f32 %v693_v15  ;;  %vm1406_vm10 = vcmp.eq.f32.partialorder %v757_v23, 8.507059e+37  ;;  %v760_v41 = vor.u32 1.1754944e-38, %v759_v26 }
 0x2c5   : > { %1062 = vpow2.f32 %v683_v18  ;;  %v689_v34 = vmul.f32 1.442695, %v676_v27  ;;  %v805_v49 = vor.u32 1.1754944e-38, %v804_v33  ;;  %vm723_vm13 = vweird.f32 %v1386_v17 }
 0x2c6   : > { %v1053_v24 = vpop.eup %1052  ;;  %v707_v25 = vadd.f32 %v1049_v8, %v706_v22  ;;  %v727_v54 = vand.u32 2147483647, %v1386_v17  ;;  %v729_v55 = vand.u32 2147483648, %v1386_v17  ;;  %vm803_vm2 = vcmp.eq.f32.partialorder %v802_v38, 8.507059e+37 }
 0x2c7   : > { %v1055_v28 = vpop.eup %1054  ;;  %v749_v30 = vmul.f32 %v1053_v24, %v1380_v6  ;;  %vm754_vm11 = vweird.f32 %v1053_v24  ;;  %1064 = vpow2.f32 %v689_v34 }
 0x2c8   : > { %v711_v31 = vsel %vm710_vm6, %v1049_v8, %v707_v25  ;;  %v794_v32 = vmul.f32 %v1055_v28, %v1382_v9  ;;  %v1057_v35 = vpop.eup %1056  ;;  %vm799_vm12 = vweird.f32 %v1055_v28  ;;  %vm755_vm14 = vmor %vm753_vm8, %vm754_vm11  ;;  %v730_v1 = vor.u32 1.1754944e-38, %v729_v55 }
 0x2c9   : > { %v716_v36 = vsel %vm713_vm7, %v715_v29, %v711_v31  ;;  %v750_v37 = vsub.f32 1.0, %v749_v30  ;;  %v1059_v39 = vpop.eup %1058  ;;  %v699_v43 = vadd.f32 1.0, %v1057_v35  ;;  %vm800_vm15 = vmor %vm798_vm9, %vm799_vm12  ;;  %vm728_vm4 = vcmp.eq.f32.partialorder %v727_v54, 8.507059e+37 }
 0x2ca   : > { %823 = vst.msk [vmem:[%s1396_s7] sm:$0xff] %vm331_vm0, %v716_v36  ;;  %v795_v42 = vsub.f32 1.0, %v794_v32  ;;  %v1061_v44 = vpop.eup %1060  ;;  %v719_v46 = vmul.f32 %v1059_v39, %v1386_v17  ;;  %vm724_vm1 = vweird.f32 %v1059_v39 }
 0x2cb   : > { %v751_v45 = vmul.f32 %v1053_v24, %v750_v37  ;;  %v1063_v47 = vpop.eup %1062  ;;  %1066 = vrcp.f32 %v699_v43  ;;  %v1412_v52 = vadd.f32 1.0, %v1061_v44  ;;  %vm725_vm3 = vmor %vm723_vm13, %vm724_vm1  ;;  %v772_v5 = vand.u32 2147483647, %v699_v43 }
 0x2cc   : > { %v796_v48 = vmul.f32 %v1055_v28, %v795_v42  ;;  %v720_v51 = vsub.f32 1.0, %v719_v46  ;;  %v1418_v56 = vadd.f32 1.0, %v1063_v47  ;;  %v774_v9 = vand.u32 2147483648, %v699_v43 }
 0x2cd   : > { %v752_v50 = vadd.f32 %v1053_v24, %v751_v45  ;;  %1068 = vrcp.f32 %v1412_v52  ;;  %v1065_v61 = vpop.eup %1064  ;;  %vm768_vm6 = vweird.f32 %v699_v43  ;;  %vm1435_vm7 = vcmp.eq.f32.partialorder %v772_v5, 8.507059e+37 }
 0x2ce   : > { %v797_v53 = vadd.f32 %v1055_v28, %v796_v48  ;;  %v721_v58 = vmul.f32 %v1059_v39, %v720_v51  ;;  %1070 = vrcp.f32 %v1418_v56  ;;  %v700_v6 = vadd.f32 1.0, %v1065_v61 }
 0x2cf   : > { %v756_v57 = vsel %vm755_vm14, %v1053_v24, %v752_v50  ;;  %v775_v17 = vor.u32 1.1754944e-38, %v774_v9  ;;  %vm813_vm8 = vweird.f32 %v1412_v52  ;;  %v819_v18 = vand.u32 2147483648, %v1412_v52 }
 0x2d0   : > { %v761_v59 = vsel %vm1406_vm10, %v760_v41, %v756_v57  ;;  %v801_v60 = vsel %vm800_vm15, %v1055_v28, %v797_v53  ;;  %v722_v63 = vadd.f32 %v1059_v39, %v721_v58  ;;  %1072 = vrcp.f32 %v700_v6 }
 0x2d1   : > { %826 = vst.msk [vmem:[%s1396_s7 + $0x18] sm:$0xff] %vm331_vm0, %v761_v59  ;;  %v806_v62 = vsel %vm803_vm2, %v805_v49, %v801_v60  ;;  %v1067_v0 = vpop.eup %1066  ;;  %v817_v20 = vand.u32 2147483647, %v1412_v52  ;;  %vm738_vm11 = vweird.f32 %v1418_v56  ;;  %v742_v23 = vand.u32 2147483647, %v1418_v56 }
 0x2d2   : > { %829 = vst.msk [vmem:[%s1396_s7 + $0x30] sm:$0xff] %vm331_vm0, %v806_v62  ;;  %v726_v2 = vsel %vm725_vm3, %v1059_v39, %v722_v63  ;;  %v764_v3 = vmul.f32 %v1067_v0, %v699_v43  ;;  %vm769_vm5 = vweird.f32 %v1067_v0  ;;  %v744_v24 = vand.u32 2147483648, %v1418_v56 }
 0x2d3   : > { %v731_v4 = vsel %vm728_vm4, %v730_v1, %v726_v2  ;;  %v1069_v7 = vpop.eup %1068  ;;  %vm770_vm9 = vmor %vm768_vm6, %vm769_vm5  ;;  %v820_v29 = vor.u32 1.1754944e-38, %v819_v18  ;;  %vm818_vm14 = vcmp.eq.f32.partialorder %v817_v20, 8.507059e+37  ;;  %vm743_vm1 = vcmp.eq.f32.partialorder %v742_v23, 8.507059e+37 }
 0x2d4   : > { %824 = vst.msk [vmem:[%s1396_s7 + $0x8] sm:$0xff] %vm331_vm0, %v731_v4  ;;  %v765_v8 = vsub.f32 1.0, %v764_v3  ;;  %v809_v10 = vmul.f32 %v1069_v7, %v1412_v52  ;;  %v1071_v11 = vpop.eup %1070  ;;  %vm814_vm10 = vweird.f32 %v1069_v7  ;;  %v745_v34 = vor.u32 1.1754944e-38, %v744_v24 }
 0x2d5   : > { %v734_v15 = vmul.f32 %v1071_v11, %v1418_v56  ;;  %vm739_vm12 = vweird.f32 %v1071_v11  ;;  %vm815_vm13 = vmor %vm813_vm8, %vm814_vm10  ;;  %v789_v37 = vand.u32 2147483648, %v700_v6  ;;  %v787_v40 = vand.u32 2147483647, %v700_v6 }
 0x2d6   : > { %v766_v12 = vmul.f32 %v1067_v0, %v765_v8  ;;  %v810_v14 = vsub.f32 1.0, %v809_v10  ;;  %v1073_v25 = vpop.eup %1072  ;;  %vm740_vm15 = vmor %vm738_vm11, %vm739_vm12  ;;  %vm783_vm3 = vweird.f32 %v700_v6 }
 0x2d7   : > { %v735_v21 = vsub.f32 1.0, %v734_v15  ;;  %v779_v30 = vmul.f32 %v1073_v25, %v700_v6  ;;  %vm784_vm2 = vweird.f32 %v1073_v25  ;;  %v790_v42 = vor.u32 1.1754944e-38, %v789_v37 }
 0x2d8   : > { %v767_v16 = vadd.f32 %v1067_v0, %v766_v12  ;;  %v811_v19 = vmul.f32 %v1069_v7, %v810_v14  ;;  %vm785_vm4 = vmor %vm783_vm3, %vm784_vm2  ;;  %vm788_vm5 = vcmp.eq.f32.partialorder %v787_v40, 8.507059e+37 }
 0x2d9   : > { %v736_v28 = vmul.f32 %v1071_v11, %v735_v21  ;;  %v780_v35 = vsub.f32 1.0, %v779_v30 }
 0x2da   : > { %v771_v22 = vsel %vm770_vm9, %v1067_v0, %v767_v16  ;;  %v812_v27 = vadd.f32 %v1069_v7, %v811_v19 }
 0x2db   : > { %v776_v26 = vsel %vm1435_vm7, %v775_v17, %v771_v22  ;;  %v737_v32 = vadd.f32 %v1071_v11, %v736_v28  ;;  %v781_v39 = vmul.f32 %v1073_v25, %v780_v35 }
 0x2dc   : > { %827 = vst.msk [vmem:[%s1396_s7 + $0x20] sm:$0xff] %vm331_vm0, %v776_v26  ;;  %v816_v31 = vsel %vm815_vm13, %v1069_v7, %v812_v27 }
 0x2dd   : > { %v821_v33 = vsel %vm818_vm14, %v820_v29, %v816_v31  ;;  %v741_v36 = vsel %vm740_vm15, %v1071_v11, %v737_v32  ;;  %v782_v41 = vadd.f32 %v1073_v25, %v781_v39 }
 0x2de   : > { %830 = vst.msk [vmem:[%s1396_s7 + $0x38] sm:$0xff] %vm331_vm0, %v821_v33  ;;  %v746_v38 = vsel %vm743_vm1, %v745_v34, %v741_v36 }
 0x2df   : > { %825 = vst.msk [vmem:[%s1396_s7 + $0x10] sm:$0xff] %vm331_vm0, %v746_v38  ;;  %v786_v43 = vsel %vm785_vm4, %v1073_v25, %v782_v41 }
 0x2e0   : > { %v791_v44 = vsel %vm788_vm5, %v790_v42, %v786_v43 }
 0x2e1   : > { %828 = vst.msk [vmem:[%s1396_s7 + $0x28] sm:$0xff] %vm331_vm0, %v791_v44 }
 0x2e2 PF: > { %s19_s26 = sadd.s32 1, %s1154_s26   ;;  %s1491_s21 = smov %s1138_s22 }
 0x2e3   : > { %p16_p0 = scmp.ge.s32.totalorder %s19_s26, 4   ;;  %s1492_s22 = smov %s1142_s23 }
 0x2e4   : > { %s1493_s23 = smov %s1246_s9  ;;  %s1494_s24 = smov %s1150_s25 }
 0x2e5   : > { %s1495_s25 = smov %s1497_s28  ;;  %18 = sbr.rel (!%p16_p0) target bundleno = 4 (0x4), region = 95 }
 0x2ea   :  { %852 = vsyncpa [#allocation7], 1 }
 0x2eb   :  { %854 = vsyncpa [#allocation7 + $0x1], 1 }

</bundles_post_ra>
